<compile_context>
chip_gen: v5e
topology: v5e:2x2
jax: 0.10.0
libtpu: 0.0.40
codegen_flags: <defaults>
</compile_context>

<pallas_src>
import math

import jax
import jax.numpy as jnp
from jax import lax
from jax.experimental import pallas as pl
from jax.experimental.pallas import tpu as pltpu


def _attn_recon_kernel(sig_ref, prm_ref, out_ref):
    # sig_ref: (3L, 1) f32, rows stacked as [overlap ; data1 ; data2]
    # prm_ref: (8, H)  f32, rows [wq, bq, wk, bk, wv, bv, wo, bo(broadcast)]
    # out_ref: (L, 1)  f32
    L = sig_ref.shape[0] // 3
    H = prm_ref.shape[1]

    ov = sig_ref[0:L, :]            # (L, 1)   overlap region
    dcat = sig_ref[L:3 * L, :]      # (2L, 1)  [data1 ; data2]

    wq = prm_ref[0:1, :]
    bq = prm_ref[1:2, :]
    wk = prm_ref[2:3, :]
    bk = prm_ref[3:4, :]
    wv = prm_ref[4:5, :]
    bv = prm_ref[5:6, :]
    wo = prm_ref[6:7, :]            # (1, H) output-proj weight row
    bo = prm_ref[7:8, 0:1]          # (1, 1) output-proj bias

    # Fold the 1/sqrt(H) attention scale into the (1,H) query rows
    # (2 tiny multiplies instead of scaling the (L,2L) score tensor).
    scale = 1.0 / math.sqrt(float(H))
    q = ov * (wq * scale) + bq * scale          # (L, H)
    kcat = dcat * wk + bk                       # (2L, H)  [k1 ; k2]
    vcat = dcat * wv + bv                       # (2L, H)  [v1 ; v2]

    # One fused QK matmul, contracting H on both operands (no k.T relayout).
    s = lax.dot_general(q, kcat, (((1,), (1,)), ((), ())),
                        preferred_element_type=jnp.float32)    # (L, 2L)

    # Per-branch numerically-stable softmax done on the full (L,2L) tensor
    # with a lane mask: lanes [0,L) = data1 branch, [L,2L) = data2 branch.
    col = lax.broadcasted_iota(jnp.int32, (L, 2 * L), 1)
    in2 = col >= L                                              # (L, 2L)
    neg_inf = jnp.float32(-jnp.inf)

    m1 = jnp.max(jnp.where(in2, neg_inf, s), axis=-1, keepdims=True)  # (L,1)
    m2 = jnp.max(jnp.where(in2, s, neg_inf), axis=-1, keepdims=True)  # (L,1)
    e = jnp.exp(s - jnp.where(in2, m2, m1))                     # (L, 2L)
    sum1 = jnp.sum(jnp.where(in2, 0.0, e), axis=-1, keepdims=True)
    sum2 = jnp.sum(jnp.where(in2, e, 0.0), axis=-1, keepdims=True)

    # linspace(0,1,L) blend weights folded straight into the normalization
    # factors (so the explicit blend add/mul disappears).  Guard L == 1.
    w = lax.broadcasted_iota(jnp.int32, (L, 1), 0).astype(jnp.float32)
    w = w * (1.0 / max(L - 1, 1))
    f1 = (1.0 - w) * pl.reciprocal(sum1, approx=False)          # (L, 1)
    f2 = w * pl.reciprocal(sum2, approx=False)                  # (L, 1)
    p = e * jnp.where(in2, f2, f1)                              # (L, 2L)

    # One fused PV matmul: (L, 2L) x (2L, H) -> already-blended output.
    blend = jnp.dot(p, vcat, preferred_element_type=jnp.float32)   # (L, H)

    # Output projection Linear(H,1) as VPU multiply + XLU lane reduction
    # (avoids an N=1 MXU pass).
    out_ref[...] = jnp.sum(blend * wo, axis=-1, keepdims=True) + bo  # (L, 1)


def attention_based_reconstruction(data1, data2, overlap_region, params):
    """data1, data2, overlap_region: float32 1-D arrays of the same length L."""
    L = overlap_region.shape[0]
    H = params["wq"].shape[0]

    # Pack the three 1-D signals into one column vector and the eight tiny
    # parameter tensors into one (8, H) slab: 2 DMA descriptors instead of 11.
    sig = jnp.concatenate([
        overlap_region.astype(jnp.float32),
        data1.astype(jnp.float32),
        data2.astype(jnp.float32),
    ]).reshape(3 * L, 1)

    prm = jnp.stack([
        params["wq"].reshape(H).astype(jnp.float32),
        params["bq"].reshape(H).astype(jnp.float32),
        params["wk"].reshape(H).astype(jnp.float32),
        params["bk"].reshape(H).astype(jnp.float32),
        params["wv"].reshape(H).astype(jnp.float32),
        params["bv"].reshape(H).astype(jnp.float32),
        params["wo"].reshape(H).astype(jnp.float32),
        jnp.broadcast_to(params["bo"].reshape(()).astype(jnp.float32), (H,)),
    ], axis=0)                                  # (8, H)

    vmem = pl.BlockSpec(memory_space=pltpu.MemorySpace.VMEM)
    out = pl.pallas_call(
        _attn_recon_kernel,
        out_shape=jax.ShapeDtypeStruct((L, 1), jnp.float32),
        in_specs=[vmem, vmem],
        out_specs=vmem,
    )(sig, prm)
    # TODO(synk): if many overlap windows exist in the real workload, add a
    # batched grid ("parallel") over windows so the MXU operands get >=128 rows.
    return out.reshape(L)


def _reference(data1, data2, overlap_region, params):
    """Pure-JAX reference mirroring the PyTorch forward, for validation."""
    H = params["wq"].shape[0]
    ov = overlap_region[:, None]
    d1 = data1[:, None]
    d2 = data2[:, None]
    q = ov @ params["wq"].T + params["bq"]
    k1 = d1 @ params["wk"].T + params["bk"]
    k2 = d2 @ params["wk"].T + params["bk"]
    v1 = d1 @ params["wv"].T + params["bv"]
    v2 = d2 @ params["wv"].T + params["bv"]
    scale = 1.0 / jnp.sqrt(jnp.float32(H))
    a1 = jax.nn.softmax(q @ k1.T * scale, axis=-1)
    a2 = jax.nn.softmax(q @ k2.T * scale, axis=-1)
    o1 = a1 @ v1
    o2 = a2 @ v2
    L = overlap_region.shape[0]
    w = jnp.linspace(0.0, 1.0, L)[:, None]
    blend = o1 * (1.0 - w) + o2 * w
    return (blend @ params["wo"].T + params["bo"]).squeeze(-1)


if __name__ == "__main__":
    L = 16          # overlap-region length (sequence)
    H = 32          # hidden_dim

    key = jax.random.PRNGKey(0)
    keys = jax.random.split(key, 11)

    # deterministic synthetic parameters (shapes match the nn.Linear layers)
    params = {
        "wq": jax.random.normal(keys[0], (H, 1), jnp.float32) * 0.5,  # query_proj.weight
        "bq": jax.random.normal(keys[1], (H,), jnp.float32) * 0.1,    # query_proj.bias
        "wk": jax.random.normal(keys[2], (H, 1), jnp.float32) * 0.5,  # key_proj.weight
        "bk": jax.random.normal(keys[3], (H,), jnp.float32) * 0.1,    # key_proj.bias
        "wv": jax.random.normal(keys[4], (H, 1), jnp.float32) * 0.5,  # value_proj.weight
        "bv": jax.random.normal(keys[5], (H,), jnp.float32) * 0.1,    # value_proj.bias
        "wo": jax.random.normal(keys[6], (1, H), jnp.float32) * 0.5,  # output_proj.weight
        "bo": jax.random.normal(keys[7], (1,), jnp.float32) * 0.1,    # output_proj.bias
    }

    data1 = jax.random.normal(keys[8], (L,), jnp.float32)
    data2 = jax.random.normal(keys[9], (L,), jnp.float32)
    overlap_region = jax.random.normal(keys[10], (L,), jnp.float32)

    out = attention_based_reconstruction(data1, data2, overlap_region, params)
    out = jax.block_until_ready(out)

    ref = jax.block_until_ready(_reference(data1, data2, overlap_region, params))
    assert out.shape == (L,)
    # Tolerance allows for MXU f32 accumulation-order differences vs XLA ref.
    assert jnp.allclose(out, ref, atol=1e-4, rtol=1e-4), (out, ref)

    print("KERNEL_OK")
</pallas_src>

<mosaic_0001>
module attributes {stable_mosaic.version = 11 : i64} {
  func.func @_attn_recon_kernel(%arg0: memref<48x1xf32, #tpu.memory_space<vmem>>, %arg1: memref<8x32xf32, #tpu.memory_space<vmem>>, %arg2: memref<16x1xf32, #tpu.memory_space<vmem>>) attributes {dimension_semantics = [], scalar_prefetch = 0 : i64, scratch_operands = 0 : i64, tpu.core_type = #tpu.core_type<tc>} {
    %c0 = arith.constant 0 : index
    %c0_0 = arith.constant 0 : index
    %0 = vector.load %arg0[%c0, %c0_0] : memref<48x1xf32, #tpu.memory_space<vmem>>, vector<16x1xf32>
    %c16 = arith.constant 16 : index
    %c0_1 = arith.constant 0 : index
    %1 = vector.load %arg0[%c16, %c0_1] : memref<48x1xf32, #tpu.memory_space<vmem>>, vector<32x1xf32>
    %c0_2 = arith.constant 0 : index
    %c0_3 = arith.constant 0 : index
    %2 = vector.load %arg1[%c0_2, %c0_3] : memref<8x32xf32, #tpu.memory_space<vmem>>, vector<1x32xf32>
    %c1 = arith.constant 1 : index
    %c0_4 = arith.constant 0 : index
    %3 = vector.load %arg1[%c1, %c0_4] : memref<8x32xf32, #tpu.memory_space<vmem>>, vector<1x32xf32>
    %c2 = arith.constant 2 : index
    %c0_5 = arith.constant 0 : index
    %4 = vector.load %arg1[%c2, %c0_5] : memref<8x32xf32, #tpu.memory_space<vmem>>, vector<1x32xf32>
    %c3 = arith.constant 3 : index
    %c0_6 = arith.constant 0 : index
    %5 = vector.load %arg1[%c3, %c0_6] : memref<8x32xf32, #tpu.memory_space<vmem>>, vector<1x32xf32>
    %c4 = arith.constant 4 : index
    %c0_7 = arith.constant 0 : index
    %6 = vector.load %arg1[%c4, %c0_7] : memref<8x32xf32, #tpu.memory_space<vmem>>, vector<1x32xf32>
    %c5 = arith.constant 5 : index
    %c0_8 = arith.constant 0 : index
    %7 = vector.load %arg1[%c5, %c0_8] : memref<8x32xf32, #tpu.memory_space<vmem>>, vector<1x32xf32>
    %c6 = arith.constant 6 : index
    %c0_9 = arith.constant 0 : index
    %8 = vector.load %arg1[%c6, %c0_9] : memref<8x32xf32, #tpu.memory_space<vmem>>, vector<1x32xf32>
    %c7 = arith.constant 7 : index
    %c0_10 = arith.constant 0 : index
    %9 = vector.load %arg1[%c7, %c0_10] : memref<8x32xf32, #tpu.memory_space<vmem>>, vector<1x1xf32>
    %cst = arith.constant 0.176776692 : f32
    %10 = vector.broadcast %cst : f32 to vector<1x32xf32>
    %11 = arith.mulf %2, %10 : vector<1x32xf32>
    %12 = vector.broadcast %0 : vector<16x1xf32> to vector<16x32xf32>
    %13 = vector.broadcast %11 : vector<1x32xf32> to vector<16x32xf32>
    %14 = arith.mulf %12, %13 : vector<16x32xf32>
    %cst_11 = arith.constant 0.176776692 : f32
    %15 = vector.broadcast %cst_11 : f32 to vector<1x32xf32>
    %16 = arith.mulf %3, %15 : vector<1x32xf32>
    %17 = vector.broadcast %16 : vector<1x32xf32> to vector<16x32xf32>
    %18 = arith.addf %14, %17 : vector<16x32xf32>
    %19 = vector.broadcast %1 : vector<32x1xf32> to vector<32x32xf32>
    %20 = vector.broadcast %4 : vector<1x32xf32> to vector<32x32xf32>
    %21 = arith.mulf %19, %20 : vector<32x32xf32>
    %22 = vector.broadcast %5 : vector<1x32xf32> to vector<32x32xf32>
    %23 = arith.addf %21, %22 : vector<32x32xf32>
    %24 = vector.broadcast %1 : vector<32x1xf32> to vector<32x32xf32>
    %25 = vector.broadcast %6 : vector<1x32xf32> to vector<32x32xf32>
    %26 = arith.mulf %24, %25 : vector<32x32xf32>
    %27 = vector.broadcast %7 : vector<1x32xf32> to vector<32x32xf32>
    %28 = arith.addf %26, %27 : vector<32x32xf32>
    %cst_12 = arith.constant dense<0.000000e+00> : vector<16x32xf32>
    %29 = tpu.matmul %18, %23, %cst_12 {dimension_numbers = #tpu.dot_dimension_numbers<[1], [1], [0], [0], [0, 0, 1, 0], [], []>} : vector<16x32xf32>, vector<32x32xf32>, vector<16x32xf32> -> vector<16x32xf32>
    %30 = tpu.iota {dimensions = array<i32: 1>} : vector<16x32xi32>
    %c16_i32 = arith.constant 16 : i32
    %31 = vector.broadcast %c16_i32 : i32 to vector<16x32xi32>
    %32 = arith.cmpi sge, %30, %31 : vector<16x32xi32>
    %cst_13 = arith.constant 0xFF800000 : f32
    %33 = vector.broadcast %cst_13 : f32 to vector<16x32xf32>
    %34 = arith.select %32, %33, %29 : vector<16x32xi1>, vector<16x32xf32>
    %cst_14 = arith.constant dense<0xFF800000> : vector<16xf32>
    %35 = vector.multi_reduction <maximumf>, %34, %cst_14 [1] : vector<16x32xf32> to vector<16xf32>
    %36 = vector.shape_cast %35 : vector<16xf32> to vector<16x1xf32>
    %cst_15 = arith.constant 0xFF800000 : f32
    %37 = vector.broadcast %cst_15 : f32 to vector<16x32xf32>
    %38 = arith.select %32, %29, %37 : vector<16x32xi1>, vector<16x32xf32>
    %cst_16 = arith.constant dense<0xFF800000> : vector<16xf32>
    %39 = vector.multi_reduction <maximumf>, %38, %cst_16 [1] : vector<16x32xf32> to vector<16xf32>
    %40 = vector.shape_cast %39 : vector<16xf32> to vector<16x1xf32>
    %41 = vector.shape_cast %40 : vector<16x1xf32> to vector<16x1xf32>
    %42 = vector.broadcast %41 : vector<16x1xf32> to vector<16x32xf32>
    %43 = vector.shape_cast %36 : vector<16x1xf32> to vector<16x1xf32>
    %44 = vector.broadcast %43 : vector<16x1xf32> to vector<16x32xf32>
    %45 = arith.select %32, %42, %44 : vector<16x32xi1>, vector<16x32xf32>
    %46 = arith.subf %29, %45 : vector<16x32xf32>
    %47 = math.exp %46 : vector<16x32xf32>
    %cst_17 = arith.constant 0.000000e+00 : f32
    %48 = vector.broadcast %cst_17 : f32 to vector<16x32xf32>
    %49 = arith.select %32, %48, %47 : vector<16x32xi1>, vector<16x32xf32>
    %cst_18 = arith.constant dense<0.000000e+00> : vector<16xf32>
    %50 = vector.multi_reduction <add>, %49, %cst_18 [1] : vector<16x32xf32> to vector<16xf32>
    %51 = vector.shape_cast %50 : vector<16xf32> to vector<16x1xf32>
    %cst_19 = arith.constant 0.000000e+00 : f32
    %52 = vector.broadcast %cst_19 : f32 to vector<16x32xf32>
    %53 = arith.select %32, %47, %52 : vector<16x32xi1>, vector<16x32xf32>
    %cst_20 = arith.constant dense<0.000000e+00> : vector<16xf32>
    %54 = vector.multi_reduction <add>, %53, %cst_20 [1] : vector<16x32xf32> to vector<16xf32>
    %55 = vector.shape_cast %54 : vector<16xf32> to vector<16x1xf32>
    %56 = tpu.iota {dimensions = array<i32: 0>} : vector<16x1xi32>
    %57 = arith.sitofp %56 : vector<16x1xi32> to vector<16x1xf32>
    %cst_21 = arith.constant 0.0666666701 : f32
    %58 = vector.broadcast %cst_21 : f32 to vector<16x1xf32>
    %59 = arith.mulf %57, %58 : vector<16x1xf32>
    %cst_22 = arith.constant 1.000000e+00 : f32
    %60 = vector.broadcast %cst_22 : f32 to vector<16x1xf32>
    %61 = arith.subf %60, %59 : vector<16x1xf32>
    %62 = tpu.reciprocal %51 : vector<16x1xf32> -> vector<16x1xf32>
    %63 = arith.mulf %61, %62 : vector<16x1xf32>
    %64 = tpu.reciprocal %55 : vector<16x1xf32> -> vector<16x1xf32>
    %65 = arith.mulf %59, %64 : vector<16x1xf32>
    %66 = vector.shape_cast %65 : vector<16x1xf32> to vector<16x1xf32>
    %67 = vector.broadcast %66 : vector<16x1xf32> to vector<16x32xf32>
    %68 = vector.shape_cast %63 : vector<16x1xf32> to vector<16x1xf32>
    %69 = vector.broadcast %68 : vector<16x1xf32> to vector<16x32xf32>
    %70 = arith.select %32, %67, %69 : vector<16x32xi1>, vector<16x32xf32>
    %71 = arith.mulf %47, %70 : vector<16x32xf32>
    %cst_23 = arith.constant dense<0.000000e+00> : vector<16x32xf32>
    %72 = tpu.matmul %71, %28, %cst_23 {dimension_numbers = #tpu.dot_dimension_numbers<[1], [0], [0], [1], [0, 0, 1, 1], [], []>} : vector<16x32xf32>, vector<32x32xf32>, vector<16x32xf32> -> vector<16x32xf32>
    %73 = vector.broadcast %8 : vector<1x32xf32> to vector<16x32xf32>
    %74 = arith.mulf %72, %73 : vector<16x32xf32>
    %cst_24 = arith.constant dense<0.000000e+00> : vector<16xf32>
    %75 = vector.multi_reduction <add>, %74, %cst_24 [1] : vector<16x32xf32> to vector<16xf32>
    %76 = vector.shape_cast %75 : vector<16xf32> to vector<16x1xf32>
    %77 = vector.broadcast %9 : vector<1x1xf32> to vector<16x1xf32>
    %78 = arith.addf %76, %77 : vector<16x1xf32>
    %c0_25 = arith.constant 0 : index
    %c0_26 = arith.constant 0 : index
    %79 = vector.load %arg2[%c0_25, %c0_26] : memref<16x1xf32, #tpu.memory_space<vmem>>, vector<16x1xf32>
    tpu.vector_store %arg2[%c0_25, %c0_26], %78 {strides = array<i32>} : memref<16x1xf32, #tpu.memory_space<vmem>>, vector<16x1xf32>,
    return
  }
}

</mosaic_0001>

<bundles_post_ra>
// kernel: tpu_custom_call.1
= control target key start
LH: loop header
LB: loop body
LE: loop exit
PB: predicated region body
PF: predicated region fallthrough
CT: control target
= control target key end

     0   :  { %v323_v0 = vmov 0   ;;  %vm83_vm0 = vcmask 261120   ;;  %v125_v43 = vlaneseq  ;;  %s452_s0 = inlined_call_operand.vmem [shape: f32[48,1], index: 0, kind: input, shape index: {}]   ;;  %s453_s1 = inlined_call_operand.vmem [shape: f32[8,32], index: 1, kind: input, shape index: {}]   ;;  %s454_s2 = inlined_call_operand.vmem [shape: f32[16,1], index: 2, kind: output, shape index: {}]  }
   0x1   :  { %303 = vset.pattern.permute.xlu1 %v323_v0  ;;  %302 = vset.pattern.permute.xlu0 %v323_v0  ;;  %v16_v1 = vld [vmem:[%s452_s0 + $0x28] sm:$0xff]  ;;  %v14_v2 = vld [vmem:[%s452_s0 + $0x18] sm:$0xff]  ;;  %v11_v3 = vld [vmem:[%s452_s0] sm:$0xff] }
   0x2   :  { %60 = vperm.xlu0 %302, %v16_v1   ;;  %50 = vperm.xlu1 %303, %v14_v2   ;;  %v15_v4 = vld [vmem:[%s452_s0 + $0x20] sm:$0xff]  ;;  %v13_v5 = vld [vmem:[%s452_s0 + $0x10] sm:$0xff]  ;;  %v12_v6 = vld [vmem:[%s452_s0 + $0x8] sm:$0xff]  ;;  %v385_v44 = vand.u32 127, %v125_v43 }
   0x3   :  { %304 = vset.pattern.permute.xlu2 %v323_v0  ;;  %v305_v7 = vld [vmem:[%s453_s1 + $0x2] ss:$0 sm:$0xff]  ;;  %v306_v8 = vld [vmem:[%s453_s1 + $0x4] ss:$0 sm:$0xff]  ;;  %v307_v9 = vld [vmem:[%s453_s1 + $0x3] ss:$0 sm:$0xff] }
   0x4   :  { %28 = vperm.xlu2 %304, %v11_v3   ;;  %v308_v10 = vld [vmem:[%s453_s1 + $0x5] ss:$0 sm:$0xff]  ;;  %v17_v18 = vld [vmem:[%s453_s1] sm:$0x1]  ;;  %v18_v26 = vld [vmem:[%s453_s1 + $0x1] sm:$0x1] }
   0x5   :  { %v25_v24 = vmul.f32 0.17677669, %v17_v18  ;;  %v39_v31 = vmul.f32 0.17677669, %v18_v26  ;;  %vm127_vm1 = vcmp.ge.s32.totalorder %v385_v44, 16 }
   0x6   :  { %v310_v44 = vld [vmem:[%s453_s1 + $0x7] ss:$0 sm:$0xff] }
   0x7   :  { %v36_v30 = vperm.slane %v25_v24, 0  ;;  %v40_v37 = vperm.slane %v39_v31, 0 }
   0xa   :  { %55 = vperm.xlu0 %302, %v15_v4   ;;  %45 = vperm.xlu1 %303, %v13_v5  }
   0xc   :  { %33 = vperm.xlu2 %304, %v12_v6  }
  0x5e   :  { %v29_v17 = vpop.permute.xlu2 %28 }
  0x5f   :  { %v37_v38 = vmul.f32 %v36_v30, %v29_v17 }
  0x61   :  { %v41_v41 = vadd.f32 %v40_v37, %v37_v38 }
  0x66   :  { %v34_v35 = vpop.permute.xlu2 %33 }
  0x67   :  { %v38_v39 = vmul.f32 %v36_v30, %v34_v35 }
  0x69   :  { %v42_v42 = vadd.f32 %v40_v37, %v38_v39 }
  0x74   :  { %v61_v11 = vpop.permute.xlu0 %60  ;;  %v51_v12 = vpop.permute.xlu1 %50 }
  0x75   :  { %v67_v13 = vmul.f32 %v305_v7, %v61_v11  ;;  %v77_v14 = vmul.f32 %v306_v8, %v61_v11  ;;  %v75_v23 = vmul.f32 %v306_v8, %v51_v12  ;;  %v65_v25 = vmul.f32 %v305_v7, %v51_v12 }
  0x77   :  { %v72_v15 = vadd.f32 %v307_v9, %v67_v13  ;;  %v82_v16 = vadd.f32 %v308_v10, %v77_v14  ;;  %v80_v32 = vadd.f32 %v308_v10, %v75_v23  ;;  %v70_v33 = vadd.f32 %v307_v9, %v65_v25 }
  0x78   :  { %v169_v13 = vshrl.u32 %v125_v43, 7 }
  0x79   :  { %289 = vmatpush.xpose.msk.msra.mxu0 %vm83_vm0, %v72_v15  ;;  %297 = vmatpush.xpose.msk.msra.mxu2 %vm83_vm0, %v72_v15 }
  0x7a   :  { %259 = vmatpush.msra.mxu1 %v82_v16  ;;  %v171_v15 = vcvt.s32.f32 %v169_v13  ;;  %v170_v38 = vadd.s32 8, %v169_v13 }
  0x7c   :  { %v56_v19 = vpop.permute.xlu0 %55  ;;  %v46_v22 = vpop.permute.xlu1 %45 }
  0x7d   :  { %v66_v20 = vmul.f32 %v305_v7, %v56_v19  ;;  %v76_v21 = vmul.f32 %v306_v8, %v56_v19  ;;  %v74_v29 = vmul.f32 %v306_v8, %v46_v22  ;;  %v64_v34 = vmul.f32 %v305_v7, %v46_v22 }
  0x7f   :  { %v71_v27 = vadd.f32 %v307_v9, %v66_v20  ;;  %v81_v28 = vadd.f32 %v308_v10, %v76_v21  ;;  %v79_v36 = vadd.f32 %v308_v10, %v74_v29  ;;  %v69_v40 = vadd.f32 %v307_v9, %v64_v34 }
  0x80   :  { %v173_v21 = vmul.f32 0.06666667, %v171_v15 }
  0x81   :  { %290 = vmatpush.xpose.msk.msra.mxu0 %vm83_vm0, %v71_v27  ;;  %298 = vmatpush.xpose.msk.msra.mxu2 %vm83_vm0, %v71_v27 }
  0x82   :  { %260 = vmatpush.msra.mxu1 %v81_v28 }
  0x84   :  { %261 = vmatpush.msra.mxu1 %v80_v32 }
  0x85   :  { %291 = vmatpush.xpose.msk.msra.mxu0 %vm83_vm0, %v70_v33  ;;  %299 = vmatpush.xpose.msk.msra.mxu2 %vm83_vm0, %v70_v33  ;;  %v175_v33 = vsub.f32 1.0, %v173_v21 }
  0x86   :  { %262 = vmatpush.msra.mxu1 %v79_v36 }
  0x89   :  { %292 = vmatpush.xpose.msk.msra.mxu0 %vm83_vm0, %v69_v40  ;;  %300 = vmatpush.xpose.msk.msra.mxu2 %vm83_vm0, %v69_v40 }
  0x8c   :  { %293 = vmatmul.msk.f32.vlgmr.msra.gmra.mxu0 %vm83_vm0, %v41_v41  ;;  %294 = vmatmul.msk.f32.vlgmr.msra.gmra.mxu2 %vm83_vm0, %v42_v42 }
 0x109   :  { %v119_v45 = vpop.f32.mrf.mxu0 }
 0x10a   :  { %v136_v46 = vsel %vm127_vm1, %v119_v45, -inf  ;;  %v128_v47 = vsel %vm127_vm1, -inf, %v119_v45 }
 0x10b   :  { %v138_v48 = vsel %vm83_vm0, %v136_v46, -inf  ;;  %v130_v49 = vsel %vm83_vm0, %v128_v47, -inf  ;;  %v172_v46 = vcvt.s32.f32 %v170_v38 }
 0x10c   :  { %139 = vmax.xlane.f32.xlu1 %v138_v48  ;;  %131 = vmax.xlane.f32.xlu0 %v130_v49 }
 0x10f   :  { %v122_v50 = vpop.f32.mrf.mxu2 }
 0x110   :  { %v129_v51 = vsel %vm127_vm1, -inf, %v122_v50  ;;  %v137_v53 = vsel %vm127_vm1, %v122_v50, -inf }
 0x111   :  { %v133_v52 = vsel %vm83_vm0, %v129_v51, -inf  ;;  %v141_v54 = vsel %vm83_vm0, %v137_v53, -inf }
 0x112   :  { %134 = vmax.xlane.f32.xlu2 %v133_v52 }
 0x11a   :  { %142 = vmax.xlane.f32.xlu2 %v141_v54  ;;  %v174_v54 = vmul.f32 0.06666667, %v172_v46 }
 0x17f   :  { %v140_v55 = vpop.xlane.xlu1 %139  ;;  %v132_v56 = vpop.xlane.xlu0 %131 }
 0x180   :  { %v144_v57 = vsel %vm127_vm1, %v140_v55, %v132_v56 }
 0x181   :  { %v146_v58 = vsub.f32 %v119_v45, %v144_v57 }
 0x183   :  { %v148_v59 = vmul.f32 1.442695, %v146_v58 }
 0x185   :  { %311 = vpow2.f32 %v148_v59  ;;  %v135_v60 = vpop.xlane.xlu2 %134 }
 0x18b   :  { %v402_v61 = vpop.eup %311 }
 0x18c   :  { %v160_v62 = vsel %vm127_vm1, %v402_v61, 0.0  ;;  %v152_v63 = vsel %vm127_vm1, 0.0, %v402_v61 }
 0x18d   :  { %v143_v0 = vpop.xlane.xlu2 %142  ;;  %v162_v1 = vsel %vm83_vm0, %v160_v62, 0.0  ;;  %v154_v2 = vsel %vm83_vm0, %v152_v63, 0.0 }
 0x18e   :  { %v145_v3 = vsel %vm127_vm1, %v143_v0, %v135_v60  ;;  %163 = vadd.xlane.f32.xlu1 %v162_v1  ;;  %155 = vadd.xlane.f32.xlu0 %v154_v2 }
 0x18f   :  { %v147_v4 = vsub.f32 %v122_v50, %v145_v3 }
 0x191   :  { %v150_v5 = vmul.f32 1.442695, %v147_v4 }
 0x193   :  { %313 = vpow2.f32 %v150_v5 }
 0x199   :  { %v414_v6 = vpop.eup %313 }
 0x19a   :  { %v161_v7 = vsel %vm127_vm1, %v414_v6, 0.0  ;;  %v153_v8 = vsel %vm127_vm1, 0.0, %v414_v6 }
 0x19b   :  { %v165_v9 = vsel %vm83_vm0, %v161_v7, 0.0  ;;  %v157_v10 = vsel %vm83_vm0, %v153_v8, 0.0 }
 0x19c   :  { %166 = vadd.xlane.f32.xlu0 %v165_v9  ;;  %158 = vadd.xlane.f32.xlu2 %v157_v10  ;;  %v309_v10 = vld [vmem:[%s453_s1 + $0x6] ss:$0 sm:$0xff] }
 0x201   :  { %v164_v11 = vpop.xlane.xlu1 %163  ;;  %v156_v12 = vpop.xlane.xlu0 %155 }
 0x202   :  { %315 = vrcp.f32 %v164_v11  ;;  %v218_v23 = vand.u32 2147483648, %v164_v11  ;;  %v188_v24 = vand.u32 2147483648, %v156_v12  ;;  %v216_v25 = vand.u32 2147483647, %v164_v11 }
 0x203   :  { %317 = vrcp.f32 %v156_v12  ;;  %v186_v27 = vand.u32 2147483647, %v156_v12  ;;  %vm212_vm4 = vweird.f32 %v164_v11  ;;  %vm182_vm6 = vweird.f32 %v156_v12 }
 0x204   :  { %v219_v35 = vor.u32 1.1754944e-38, %v218_v23  ;;  %v189_v36 = vor.u32 1.1754944e-38, %v188_v24  ;;  %vm217_vm8 = vcmp.eq.f32.partialorder %v216_v25, 8.507059e+37 }
 0x205   :  { %vm187_vm9 = vcmp.eq.f32.partialorder %v186_v27, 8.507059e+37 }
 0x208   :  { %v316_v14 = vpop.eup %315 }
 0x209   :  { %v318_v16 = vpop.eup %317  ;;  %v208_v17 = vmul.f32 %v316_v14, %v164_v11  ;;  %vm213_vm2 = vweird.f32 %v316_v14 }
 0x20a   :  { %v178_v18 = vmul.f32 %v318_v16, %v156_v12  ;;  %vm183_vm3 = vweird.f32 %v318_v16  ;;  %vm424_vm5 = vmor %vm212_vm4, %vm213_vm2 }
 0x20b   :  { %v209_v19 = vsub.f32 1.0, %v208_v17  ;;  %vm184_vm7 = vmor %vm182_vm6, %vm183_vm3 }
 0x20c   :  { %v179_v20 = vsub.f32 1.0, %v178_v18 }
 0x20d   :  { %v210_v22 = vmul.f32 %v316_v14, %v209_v19 }
 0x20e   :  { %v180_v26 = vmul.f32 %v318_v16, %v179_v20 }
 0x20f   :  { %v211_v28 = vadd.f32 %v316_v14, %v210_v22  ;;  %v167_v29 = vpop.xlane.xlu0 %166  ;;  %v159_v30 = vpop.xlane.xlu2 %158 }
 0x210   :  { %v181_v32 = vadd.f32 %v318_v16, %v180_v26  ;;  %319 = vrcp.f32 %v167_v29  ;;  %v232_v52 = vand.u32 2147483648, %v167_v29  ;;  %v230_v56 = vand.u32 2147483647, %v167_v29 }
 0x211   :  { %v215_v34 = vsel %vm424_vm5, %v316_v14, %v211_v28  ;;  %321 = vrcp.f32 %v159_v30  ;;  %v202_v57 = vand.u32 2147483648, %v159_v30  ;;  %v200_v59 = vand.u32 2147483647, %v159_v30 }
 0x212   :  { %v185_v37 = vsel %vm184_vm7, %v318_v16, %v181_v32  ;;  %v220_v40 = vsel %vm217_vm8, %v219_v35, %v215_v34  ;;  %vm226_vm12 = vweird.f32 %v167_v29  ;;  %v233_v62 = vor.u32 1.1754944e-38, %v232_v52 }
 0x213   :  { %v190_v39 = vsel %vm187_vm9, %v189_v36, %v185_v37  ;;  %v235_v42 = vmul.f32 %v220_v40, %v173_v21  ;;  %vm196_vm14 = vweird.f32 %v159_v30  ;;  %vm231_vm15 = vcmp.eq.f32.partialorder %v230_v56, 8.507059e+37 }
 0x214   :  { %v205_v41 = vmul.f32 %v190_v39, %v175_v33  ;;  %v203_v1 = vor.u32 1.1754944e-38, %v202_v57  ;;  %vm201_vm3 = vcmp.eq.f32.partialorder %v200_v59, 8.507059e+37 }
 0x216   :  { %v320_v43 = vpop.eup %319  ;;  %v237_v45 = vsel %vm127_vm1, %v235_v42, %v205_v41 }
 0x217   :  { %v322_v47 = vpop.eup %321  ;;  %v222_v48 = vmul.f32 %v320_v43, %v167_v29  ;;  %v239_v49 = vmul.f32 %v402_v61, %v237_v45  ;;  %vm227_vm10 = vweird.f32 %v320_v43  ;;  %v176_v61 = vsub.f32 1.0, %v174_v54 }
 0x218   :  { %v192_v50 = vmul.f32 %v322_v47, %v159_v30  ;;  %vm197_vm11 = vweird.f32 %v322_v47  ;;  %vm228_vm13 = vmor %vm226_vm12, %vm227_vm10 }
 0x219   :  { %v223_v51 = vsub.f32 1.0, %v222_v48  ;;  %295 = vmatmul.msk.f32.vlgmr.msra.gmra.mxu1 %vm83_vm0, %v239_v49  ;;  %vm198_vm2 = vmor %vm196_vm14, %vm197_vm11 }
 0x21a   :  { %v193_v53 = vsub.f32 1.0, %v192_v50 }
 0x21b   :  { %v224_v55 = vmul.f32 %v320_v43, %v223_v51 }
 0x21c   :  { %v194_v58 = vmul.f32 %v322_v47, %v193_v53 }
 0x21d   :  { %v225_v60 = vadd.f32 %v320_v43, %v224_v55 }
 0x21e   :  { %v195_v63 = vadd.f32 %v322_v47, %v194_v58 }
 0x21f   :  { %v229_v0 = vsel %vm228_vm13, %v320_v43, %v225_v60 }
 0x220   :  { %v234_v2 = vsel %vm231_vm15, %v233_v62, %v229_v0  ;;  %v199_v3 = vsel %vm198_vm2, %v322_v47, %v195_v63 }
 0x221   :  { %v204_v4 = vsel %vm201_vm3, %v203_v1, %v199_v3  ;;  %v236_v5 = vmul.f32 %v234_v2, %v174_v54 }
 0x222   :  { %v206_v7 = vmul.f32 %v204_v4, %v176_v61 }
 0x224   :  { %v238_v8 = vsel %vm127_vm1, %v236_v5, %v206_v7  ;;  %vm282_vm1 = vcmask 7168  }
 0x225   :  { %v240_v9 = vmul.f32 %v414_v6, %v238_v8 }
 0x227   :  { %296 = vmatmul.msk.f32.gmra.mxu1 %vm83_vm0, %v240_v9 }
 0x296   :  { %v264_v11 = vpop.f32.mrf.mxu1 }
 0x297   :  { %v271_v12 = vmul.f32 %v309_v10, %v264_v11 }
 0x299   :  { %v273_v13 = vsel %vm83_vm0, %v271_v12, 0.0 }
 0x29a   :  { %274 = vadd.xlane.f32.xlu1 %v273_v13 }
 0x2a4   :  { %v267_v14 = vpop.f32.mrf.mxu1 }
 0x2a5   :  { %v272_v15 = vmul.f32 %v309_v10, %v267_v14 }
 0x2a7   :  { %v276_v16 = vsel %vm83_vm0, %v272_v15, 0.0 }
 0x2a8   :  { %277 = vadd.xlane.f32.xlu2 %v276_v16 }
 0x30d   :  { %v275_v6 = vpop.xlane.xlu1 %274 }
 0x30e   :  { %v280_v17 = vadd.f32 %v310_v44, %v275_v6 }
 0x310   :  { %283 = vst.msk [vmem:[%s454_s2] sm:$0xff] %vm282_vm1, %v280_v17 }
 0x31b   :  { %v278_v18 = vpop.xlane.xlu2 %277 }
 0x31c   :  { %v281_v19 = vadd.f32 %v310_v44, %v278_v18 }
 0x31e   :  { %284 = vst.msk [vmem:[%s454_s2 + $0x8] sm:$0xff] %vm282_vm1, %v281_v19 }

</bundles_post_ra>
